<compile_context>
chip_gen: v5e
topology: v5e:2x2
jax: 0.10.0
libtpu: 0.0.40
codegen_flags: <defaults>
</compile_context>

<pallas_src>
import numpy as np

import jax
import jax.numpy as jnp
from jax.experimental import pallas as pl
from jax.experimental.pallas import tpu as pltpu


def _build_weights(L, kernel_size, stride):
    """Banded (L_out, L) matrix folding edge-replicate pad + AvgPool1d."""
    pad = (kernel_size - 1) // 2
    Lp = L + 2 * pad
    out_len = (Lp - kernel_size) // stride + 1
    if out_len <= 0:
        raise ValueError(
            f"moving_avg: kernel_size={kernel_size} too large for L={L} "
            f"(padded length {Lp})"
        )
    j = np.arange(out_len)[:, None]                  # (L_out, 1) output index
    k = np.arange(kernel_size)[None, :]              # (1, K)     window tap
    # Padded tap position j*stride + k maps to original row clamp(p - pad).
    src = np.clip(j * stride + k - pad, 0, L - 1)    # (L_out, K)
    w = np.zeros((out_len, L), dtype=np.float32)
    np.add.at(
        w,
        (np.broadcast_to(j, src.shape), src),
        np.float32(1.0 / kernel_size),
    )
    return w, out_len


def _largest_divisor_leq(n, cap):
    d = int(max(1, min(n, cap)))
    while n % d != 0:
        d -= 1
    return d


def _pick_channel_tile(C):
    """Lane tile: full C if small / not 128-aligned, else a <=512 multiple of 128."""
    if C % 128 != 0 or C <= 512:
        return C
    tc = 512
    while C % tc != 0:
        tc -= 128
    return tc


def _moving_avg_kernel(w_ref, x_ref, o_ref):
    # w_ref: (L_out, L)      -- VMEM-resident across all grid steps
    # x_ref: (BT, L, TC)     -- native (batch, time, channel) layout
    # o_ref: (BT, L_out, TC)
    # One MXU matmul per batch in the sub-tile; f32 accumulation.
    for i in range(x_ref.shape[0]):  # static unroll over the batch sub-tile
        o_ref[i] = jnp.dot(
            w_ref[...], x_ref[i], preferred_element_type=jnp.float32
        ).astype(o_ref.dtype)


def moving_avg(x, kernel_size, stride):
    """x: (B, L, C) -> (B, L_out, C); matches the PyTorch module's forward."""
    B, L, C = x.shape
    w_np, out_len = _build_weights(L, kernel_size, stride)

    # Keep the matmul in the activation dtype (bf16 stays on the fast MXU
    # path, halves W's HBM/VMEM footprint); accumulation stays f32.
    w_dtype = x.dtype if jnp.issubdtype(x.dtype, jnp.floating) else jnp.float32
    w = jnp.asarray(w_np, dtype=w_dtype)

    itemsize = jnp.dtype(x.dtype).itemsize
    tc = _pick_channel_tile(C)
    n_ct = C // tc

    # Batch tile: aim for ~2 MiB x-blocks, but keep >=2 total grid steps so
    # v7x's second TensorCore has work to pick up.
    target_bytes = 2 * 1024 * 1024
    bt = _largest_divisor_leq(B, max(1, target_bytes // max(L * tc * itemsize, 1)))
    if B >= 2 and (B // bt) * n_ct < 2:
        bt = _largest_divisor_leq(B, max(1, bt // 2))
    n_bt = B // bt

    # Scoped-VMEM budget from the actual double-buffered block sizes plus the
    # resident W, with 2x headroom (fits v7x's 64 MiB part comfortably).
    x_blk = bt * L * tc * itemsize
    o_blk = bt * out_len * tc * itemsize
    w_blk = out_len * L * jnp.dtype(w_dtype).itemsize
    need = 2 * (x_blk + o_blk) + w_blk
    vmem_limit = int(min(96 * 1024 * 1024, max(32 * 1024 * 1024, 2 * need)))

    return pl.pallas_call(
        _moving_avg_kernel,
        out_shape=jax.ShapeDtypeStruct((B, out_len, C), x.dtype),
        grid_spec=pltpu.PrefetchScalarGridSpec(
            num_scalar_prefetch=0,
            grid=(n_bt, n_ct),
            in_specs=[
                pl.BlockSpec((out_len, L), lambda b, c: (0, 0)),  # W: resident
                pl.BlockSpec((bt, L, tc), lambda b, c: (b, 0, c)),
            ],
            out_specs=pl.BlockSpec((bt, out_len, tc), lambda b, c: (b, 0, c)),
        ),
        compiler_params=pltpu.CompilerParams(
            dimension_semantics=("parallel", "parallel"),
            vmem_limit_bytes=vmem_limit,
        ),
    )(w, x)


def _reference_moving_avg(x, kernel_size, stride):
    """Pure-JAX reference matching torch semantics exactly."""
    pad = (kernel_size - 1) // 2
    front = jnp.repeat(x[:, 0:1, :], pad, axis=1)
    end = jnp.repeat(x[:, -1:, :], pad, axis=1)
    xp = jnp.concatenate([front, x, end], axis=1)
    Lp = xp.shape[1]
    out_len = (Lp - kernel_size) // stride + 1
    windows = jnp.stack(
        [xp[:, j * stride : j * stride + kernel_size, :] for j in range(out_len)],
        axis=1,
    )  # (B, out_len, K, C)
    return jnp.mean(windows, axis=2)


if __name__ == "__main__":
    key = jax.random.PRNGKey(0)
    configs = [
        # (B, L, C, kernel_size, stride)
        (2, 24, 8, 25, 1),    # Autoformer raw-series decomposition (K=25, tiny C)
        (2, 16, 8, 5, 2),     # strided variant
        (3, 20, 8, 4, 1),     # even kernel (asymmetric replicate pad)
        (4, 32, 256, 7, 1),   # d_model-like channels: lane-dense, multi-step grid
    ]
    for idx, (B, L, C, K, S) in enumerate(configs):
        k = jax.random.fold_in(key, idx)
        x = jax.random.normal(k, (B, L, C), dtype=jnp.float32)

        out = jax.block_until_ready(moving_avg(x, K, S))
        ref = _reference_moving_avg(x, K, S)

        assert out.shape == ref.shape, (idx, out.shape, ref.shape)
        assert jnp.allclose(out, ref, atol=1e-5, rtol=1e-5), f"mismatch cfg {idx}"

    print("KERNEL_OK")
</pallas_src>

<mosaic_0001>
module attributes {stable_mosaic.version = 11 : i64} {
  func.func @_moving_avg_kernel(%arg0: i32, %arg1: i32, %arg2: memref<24x24xf32, #tpu.memory_space<vmem>>, %arg3: memref<1x24x8xf32, #tpu.memory_space<vmem>>, %arg4: memref<1x24x8xf32, #tpu.memory_space<vmem>>) attributes {dimension_semantics = [#tpu.dimension_semantics<parallel>, #tpu.dimension_semantics<parallel>], iteration_bounds = array<i64: 2, 1>, scalar_prefetch = 0 : i64, scratch_operands = 0 : i64, tpu.core_type = #tpu.core_type<tc>, window_params = [{pipeline_mode = #tpu.pipeline_mode<synchronous>, transform_indices = @transform_0, window_bounds = array<i64: 24, 24>}, {transform_indices = @transform_1, window_bounds = array<i64: 1, 24, 8>}, {transform_indices = @transform_2, window_bounds = array<i64: 1, 24, 8>}]} {
    %c0 = arith.constant 0 : index
    %c0_0 = arith.constant 0 : index
    %0 = vector.load %arg2[%c0, %c0_0] : memref<24x24xf32, #tpu.memory_space<vmem>>, vector<24x24xf32>
    %c0_1 = arith.constant 0 : index
    %c0_2 = arith.constant 0 : index
    %c0_3 = arith.constant 0 : index
    %1 = vector.load %arg3[%c0_1, %c0_2, %c0_3] : memref<1x24x8xf32, #tpu.memory_space<vmem>>, vector<1x24x8xf32>
    %2 = vector.shape_cast %1 : vector<1x24x8xf32> to vector<24x8xf32>
    %cst = arith.constant dense<0.000000e+00> : vector<24x8xf32>
    %3 = tpu.matmul %0, %2, %cst {dimension_numbers = #tpu.dot_dimension_numbers<[1], [0], [0], [1], [0, 0, 1, 1], [], []>} : vector<24x24xf32>, vector<24x8xf32>, vector<24x8xf32> -> vector<24x8xf32>
    %c0_4 = arith.constant 0 : index
    %c0_5 = arith.constant 0 : index
    %c0_6 = arith.constant 0 : index
    %4 = vector.load %arg4[%c0_4, %c0_5, %c0_6] : memref<1x24x8xf32, #tpu.memory_space<vmem>>, vector<1x24x8xf32>
    %5 = vector.shape_cast %4 : vector<1x24x8xf32> to vector<24x8xf32>
    %6 = vector.shape_cast %3 : vector<24x8xf32> to vector<1x24x8xf32>
    tpu.vector_store %arg4[%c0_4, %c0_5, %c0_6], %6 {strides = array<i32>} : memref<1x24x8xf32, #tpu.memory_space<vmem>>, vector<1x24x8xf32>,
    return
  }
  func.func @transform_0(%arg0: i32, %arg1: i32) -> (i32, i32) {
    %c0_i32 = arith.constant 0 : i32
    %c0_i32_0 = arith.constant 0 : i32
    %c0_i32_1 = arith.constant 0 : i32
    return %c0_i32, %c0_i32_0 : i32, i32
  }
  func.func @transform_1(%arg0: i32, %arg1: i32) -> (i32, i32, i32) {
    %c0_i32 = arith.constant 0 : i32
    %c0_i32_0 = arith.constant 0 : i32
    return %arg0, %c0_i32, %arg1 : i32, i32, i32
  }
  func.func @transform_2(%arg0: i32, %arg1: i32) -> (i32, i32, i32) {
    %c0_i32 = arith.constant 0 : i32
    %c0_i32_0 = arith.constant 0 : i32
    return %arg0, %c0_i32, %arg1 : i32, i32, i32
  }
}

</mosaic_0001>

<bundles_post_ra>
// kernel: tpu_custom_call.1
= control target key start
LH: loop header
LB: loop body
LE: loop exit
PB: predicated region body
PF: predicated region fallthrough
CT: control target
= control target key end

     0   :  { %s386_s9 = smov 0   ;;  %s388_s10 = smov 0   ;;  %s428_s0 = inlined_call_operand.vmem [shape: f32[24,24], index: 0, kind: input, shape index: {}]   ;;  %s429_s1 = inlined_call_operand.vmem [shape: f32[2,24,8], index: 1, kind: input, shape index: {}]   ;;  %s430_s2 = inlined_call_operand.vmem [shape: f32[2,24,8], index: 2, kind: output, shape index: {}]  }
   0x1   :  { %s390_s11 = smov 0  }
   0x2 LB: > { %s24_s12 = sadd.s32 1, %s365_s10  ;;  %p308_p0 = scmp.ge.s32.totalorder %s369_s11, 1  ;;  %s369_s11 = sphi %s390_s11, %s12_s11   ;;  %s365_s10 = sphi %s388_s10, %s432_s10   ;;  %s361_s9 = sphi %s386_s9, %s431_s9  }
   0x3   : > { %p26_p1 = scmp.ge.s32.totalorder %s24_s12, 2  ;;  %p131_p2 = scmp.lt.s32.totalorder %s369_s11, 3 }
   0x5   : > { %s434_s12 = smov (%p26_p1, %s24_s12), 0  ;;  %p132_p3 = pnand %p308_p0, %p131_p2 }
   0x6   : > { %p159_p4 = scmp.lt.s32.totalorder (!%p132_p3), %s361_s9, 1 }
   0x7   : > { %135 = sbr.rel (%p132_p3) target bundleno = 155 (0x9b), region = 28 }
   0xc   : > { %s436_s9 = smov (!%p159_p4, %s361_s9), 1  ;;  %v177_v3 = vld [vmem:[%s428_s0 + $0x10] sm:$0xff]  ;;  %vm181_vm0 = vcmask 195584   ;;  %v175_v4 = vld [vmem:[%s428_s0] sm:$0xff]  ;;  %v176_v5 = vld [vmem:[%s428_s0 + $0x8] sm:$0xff]  ;;  %vm217_vm1 = vcmask 64512  }
   0xd   : > { %s322_s13 = smul.u32 24, %s436_s9 }
   0xf   : > { %s166_s16 = scalar_lea.vmem %s429_s1, %s322_s13  ;;  %s174_s25 = scalar_lea.vmem %s430_s2, %s322_s13 }
  0x10   : > { %v180_v0 = vld [vmem:[%s166_s16 + $0x10] sm:$0xff]  ;;  %v179_v1 = vld [vmem:[%s166_s16 + $0x8] sm:$0xff]  ;;  %v178_v2 = vld [vmem:[%s166_s16] sm:$0xff] }
  0x11   : > { %317 = vmatpush.msra.mxu2 %v180_v0  ;;  %204 = vmatpush.msra.mxu0 %v180_v0 }
  0x12   : > { %316 = vmatpush.msra.mxu1 %v180_v0 }
  0x13   : > { %319 = vmatpush.msra.mxu2 %v179_v1  ;;  %205 = vmatpush.msra.mxu0 %v179_v1 }
  0x14   : > { %318 = vmatpush.msra.mxu1 %v179_v1 }
  0x15   : > { %321 = vmatpush.msra.mxu2 %v178_v2  ;;  %206 = vmatpush.msra.mxu0 %v178_v2 }
  0x16   : > { %313 = vmatmul.msk.f32.vlgmr.msra.gmra.mxu2 %vm181_vm0, %v177_v3  ;;  %320 = vmatpush.msra.mxu1 %v178_v2 }
  0x17   : > { %311 = vmatmul.msk.f32.vlgmr.msra.gmra.mxu0 %vm181_vm0, %v175_v4  ;;  %312 = vmatmul.msk.f32.vlgmr.msra.gmra.mxu1 %vm181_vm0, %v176_v5 }
  0x94   : > { %v208_v6 = vpop.f32.mrf.mxu0  ;;  %v211_v7 = vpop.f32.mrf.mxu1 }
  0x95   : > { %218 = vst.msk [vmem:[%s174_s25] sm:$0xff] %vm217_vm1, %v208_v6 }
  0x96   : > { %219 = vst.msk [vmem:[%s174_s25 + $0x8] sm:$0xff] %vm217_vm1, %v211_v7 }
  0x99   : > { %v214_v8 = vpop.f32.mrf.mxu2 }
  0x9a   : > { %220 = vst.msk [vmem:[%s174_s25 + $0x10] sm:$0xff] %vm217_vm1, %v214_v8 }
  0x9b PF: > { %s12_s11 = sadd.s32 1, %s369_s11   ;;  %s431_s9 = smov %s365_s10 }
  0x9c   : > { %p9_p5 = scmp.ge.s32.totalorder %s12_s11, 4   ;;  %s432_s10 = smov %s434_s12 }
  0x9e   :  { %11 = sbr.rel (!%p9_p5) target bundleno = 2 (0x2), region = 58 }

</bundles_post_ra>
